<compile_context>
chip_gen: v5e
topology: v5e:2x2
jax: 0.10.0
libtpu: 0.0.40
codegen_flags: <defaults>
</compile_context>

<pallas_src>
import functools

import jax
import jax.numpy as jnp
from jax.experimental import pallas as pl
from jax.experimental.pallas import tpu as pltpu


def _round_up(x, m):
    return ((x + m - 1) // m) * m


@functools.lru_cache(maxsize=1)
def _vmem_capacity_bytes():
    try:
        cap = getattr(pltpu.get_tpu_info(), "vmem_capacity_bytes", None)
        if cap:
            return int(cap)
    except Exception:
        pass
    return 64 * 1024 * 1024       # conservative (v7x per-TensorCore VMEM)


def _vmem_limit_bytes():
    cap = _vmem_capacity_bytes()
    # >= 32 MiB (above v5e's 16 MiB scoped default), <= 64 MiB (v7x headroom,
    # plenty on 128 MiB v5e/v6e).
    return int(min(max(cap // 2, 32 * 1024 * 1024), 64 * 1024 * 1024))


def _vmem_use_bytes(t, d_p, resident_rows=None):
    """Rough VMEM footprint of one pallas_call with square A tile `t`."""
    a_bytes = 2 * t * t * 2                       # bf16 A tile, double-buffered
    if resident_rows is None:
        h_bytes = 2 * t * d_p * 2                 # streamed (t, d_p) bf16 tiles
    else:
        h_bytes = 2 * resident_rows * d_p * 2     # resident full h (count dbl)
    acc_bytes = t * d_p * 4                       # f32 accumulator scratch
    out_bytes = 2 * t * d_p * 4                   # output tiles, worst-case f32
    return a_bytes + h_bytes + acc_bytes + out_bytes


def _choose_tile(n, d_p, vmem_limit):
    """Largest square tile keeping VMEM use and padding waste in budget."""
    n128 = _round_up(n, 128)
    budget = int(vmem_limit * 0.9)
    for t in (2048, 1024, 512, 256, 128):
        if t > n128:
            continue
        if _vmem_use_bytes(t, d_p) > budget:
            continue
        if _round_up(n, t) - n128 > max(n // 16, 0):
            continue              # padding waste too large for this graph size
        return t
    return 128


# --------------------------------------------------------------------------
# Pallas kernel: one (T, T) x (T, Dp) MXU step of A_hat @ h, f32 accumulation
# --------------------------------------------------------------------------
def _make_matmul_kernel(tk, resident_h):
    def kernel(a_ref, h_ref, o_ref, acc_ref):
        kk = pl.program_id(1)

        @pl.when(kk == 0)
        def _init():
            acc_ref[...] = jnp.zeros_like(acc_ref)

        if resident_h:
            # Full feature table resident in VMEM; slice this step's K block.
            k0 = pl.multiple_of(kk * tk, tk)
            h_blk = h_ref[pl.ds(k0, tk), :]
        else:
            h_blk = h_ref[...]

        acc_ref[...] += jnp.dot(a_ref[...], h_blk,
                                preferred_element_type=jnp.float32)

        @pl.when(kk == pl.num_programs(1) - 1)
        def _store():
            o_ref[...] = acc_ref[...].astype(o_ref.dtype)

    return kernel


def _propagate_once(a_hat_p, h_p, *, t, out_dtype, resident_h, vmem_limit):
    """out = A_hat_p @ h_p, tiled & software-pipelined. Shapes already padded."""
    np_, np_c = a_hat_p.shape
    _, d_p = h_p.shape
    assert np_ == np_c and np_ % t == 0 and d_p % 128 == 0
    grid = (np_ // t, np_ // t)

    if resident_h:
        h_spec = pl.BlockSpec((np_, d_p), lambda i, k: (0, 0))   # resident
    else:
        h_spec = pl.BlockSpec((t, d_p), lambda i, k: (k, 0))     # streamed

    a_itemsize = jnp.dtype(a_hat_p.dtype).itemsize
    h_itemsize = jnp.dtype(h_p.dtype).itemsize
    h_reads = 1 if resident_h else grid[0]
    cost = pl.CostEstimate(
        flops=2 * np_ * np_ * d_p,
        transcendentals=0,
        bytes_accessed=(np_ * np_ * a_itemsize                    # A_hat once
                        + h_reads * np_ * d_p * h_itemsize
                        + np_ * d_p * jnp.dtype(out_dtype).itemsize))

    return pl.pallas_call(
        _make_matmul_kernel(t, resident_h),
        out_shape=jax.ShapeDtypeStruct((np_, d_p), out_dtype),
        grid_spec=pltpu.PrefetchScalarGridSpec(
            num_scalar_prefetch=0,
            grid=grid,
            in_specs=[
                pl.BlockSpec((t, t), lambda i, k: (i, k)),        # A_hat tile
                h_spec,                                           # features
            ],
            out_specs=pl.BlockSpec((t, d_p), lambda i, k: (i, 0)),
            scratch_shapes=[pltpu.VMEM((t, d_p), jnp.float32)],
        ),
        compiler_params=pltpu.CompilerParams(
            dimension_semantics=("parallel", "arbitrary"),
            vmem_limit_bytes=vmem_limit,
        ),
        cost_estimate=cost,
    )(a_hat_p, h_p)


@functools.partial(jax.jit,
                   static_argnames=("k", "tile", "resident_h", "compute_dtype"))
def lgconv_propagate(adj, feat, k, *, tile=None, resident_h=None,
                     compute_dtype=jnp.bfloat16):
    """k LightGCN hops:  feat <- norm * (A @ (feat * norm)),  norm = deg^-0.5."""
    n, d = feat.shape
    if k <= 0:
        return feat

    d_p = _round_up(d, 128)                       # lane-dense RHS / output
    vmem_limit = _vmem_limit_bytes()
    t = tile if tile is not None else _choose_tile(n, d_p, vmem_limit)
    np_ = _round_up(n, t)

    if resident_h is None:
        resident_h = (_vmem_use_bytes(t, d_p, resident_rows=np_)
                      <= int(vmem_limit * 0.9))

    # Fold deg^-0.5 into the adjacency once; normalize + bf16 downcast + pad
    # fuse into a single pass over adj that writes A_hat already padded.
    adj_f32 = adj.astype(jnp.float32)
    deg = jnp.maximum(jnp.sum(adj_f32, axis=1), 1.0)   # in_degrees.clamp(min=1)
    nrm = (deg ** -0.5)[:, None]                       # (N, 1)
    a_hat = jnp.pad((nrm * adj_f32 * nrm.T).astype(compute_dtype),
                    ((0, np_ - n), (0, np_ - n)))

    # Pad features once; run every hop in padded (Np, Dp); intermediates bf16.
    h = jnp.pad(feat.astype(compute_dtype), ((0, np_ - n), (0, d_p - d)))
    for i in range(k):
        out_dtype = feat.dtype if i == k - 1 else compute_dtype
        h = _propagate_once(a_hat, h, t=t, out_dtype=out_dtype,
                            resident_h=resident_h, vmem_limit=vmem_limit)
    return h[:n, :d]


# --------------------------------------------------------------------------
# LGConv module (JAX / Pallas port of the PyTorch/DGL reference)
# --------------------------------------------------------------------------
class LGConv:
    def __init__(self, in_feats=None, out_feats=None, k=1, cached=False,
                 bias=True, norm=None):
        # in_feats / out_feats / bias are unused by the reference forward.
        self._cached = cached
        self._cached_h = None
        self._k = k
        self.norm = norm          # optional callable applied after propagation

    def forward(self, adj, feat):
        if self._cached_h is not None:
            return self._cached_h
        h = lgconv_propagate(adj, feat, self._k)
        if self.norm is not None:
            h = self.norm(h)      # plain-JAX glue
        if self._cached:
            self._cached_h = h
        return h

    __call__ = forward


# --------------------------------------------------------------------------
# Pure-JAX reference (f32) for verification
# --------------------------------------------------------------------------
def _lgconv_reference(adj, feat, k):
    deg = jnp.maximum(jnp.sum(adj, axis=1), 1.0)
    nrm = (deg ** -0.5)[:, None]
    h = feat
    for _ in range(k):
        h = nrm * (adj @ (h * nrm))
    return h


# --------------------------------------------------------------------------
# Example / smoke test
# --------------------------------------------------------------------------
if __name__ == "__main__":
    key = jax.random.PRNGKey(0)
    k_adj, k_feat = jax.random.split(key)

    n_nodes, emb, hops = 200, 32, 2

    # Deterministic random undirected 0/1 graph (no self loops), avg degree ~10.
    upper = (jax.random.uniform(k_adj, (n_nodes, n_nodes)) < 0.05).astype(jnp.float32)
    adj = jnp.triu(upper, 1)
    adj = adj + adj.T
    feat = jax.random.normal(k_feat, (n_nodes, emb), jnp.float32)

    ref = _lgconv_reference(adj, feat, hops)
    ref_scale = float(jnp.max(jnp.abs(ref))) + 1e-6

    def rel_err(x):
        return float(jnp.max(jnp.abs(x - ref)) / ref_scale)

    # 1) Module path (auto tile selection; N=200 -> single 256x256 block).
    conv = LGConv(emb, emb, k=hops, cached=False)
    out = jax.block_until_ready(conv(adj, feat))
    assert out.shape == (n_nodes, emb)
    assert bool(jnp.all(jnp.isfinite(out))), "non-finite output"
    # bf16 MXU operands / bf16 intermediate hop + f32 accumulation.
    assert rel_err(out) < 5e-2, f"mismatch vs reference: rel err {rel_err(out)}"

    # 2) Multi-tile streamed path: grid=(2,2), per-tile feature DMA.
    out_stream = jax.block_until_ready(
        lgconv_propagate(adj, feat, hops, tile=128, resident_h=False))
    assert rel_err(out_stream) < 5e-2, \
        f"streamed-path mismatch: rel err {rel_err(out_stream)}"

    # 3) Multi-tile resident-feature path: grid=(2,2), h kept in VMEM and
    #    sliced in-kernel with pl.ds along the K axis.
    out_res = jax.block_until_ready(
        lgconv_propagate(adj, feat, hops, tile=128, resident_h=True))
    assert rel_err(out_res) < 5e-2, \
        f"resident-path mismatch: rel err {rel_err(out_res)}"

    print("KERNEL_OK")
</pallas_src>

<mosaic_0001>
module attributes {stable_mosaic.version = 11 : i64} {
  func.func @kernel(%arg0: i32, %arg1: i32, %arg2: memref<256x256xbf16, #tpu.memory_space<vmem>>, %arg3: memref<256x128xbf16, #tpu.memory_space<vmem>>, %arg4: memref<256x128xbf16, #tpu.memory_space<vmem>>, %arg5: memref<256x128xf32, #tpu.memory_space<vmem>>) attributes {dimension_semantics = [#tpu.dimension_semantics<parallel>, #tpu.dimension_semantics<arbitrary>], iteration_bounds = array<i64: 1, 1>, scalar_prefetch = 0 : i64, scratch_operands = 1 : i64, tpu.core_type = #tpu.core_type<tc>, window_params = [{transform_indices = @transform_0, window_bounds = array<i64: 256, 256>}, {pipeline_mode = #tpu.pipeline_mode<synchronous>, transform_indices = @transform_1, window_bounds = array<i64: 256, 128>}, {transform_indices = @transform_2, window_bounds = array<i64: 256, 128>}]} {
    %c0_i32 = arith.constant 0 : i32
    %0 = arith.cmpi eq, %arg1, %c0_i32 : i32
    %1 = arith.extui %0 : i1 to i32
    %c0_i32_0 = arith.constant 0 : i32
    %2 = arith.cmpi ne, %1, %c0_i32_0 : i32
    scf.if %2 {
      %cst_9 = arith.constant 0.000000e+00 : f32
      %15 = vector.broadcast %cst_9 : f32 to vector<256x128xf32>
      %c0_10 = arith.constant 0 : index
      %c0_11 = arith.constant 0 : index
      %16 = vector.load %arg5[%c0_10, %c0_11] : memref<256x128xf32, #tpu.memory_space<vmem>>, vector<256x128xf32>
      tpu.vector_store %arg5[%c0_10, %c0_11], %15 {strides = array<i32>} : memref<256x128xf32, #tpu.memory_space<vmem>>, vector<256x128xf32>,
    } else {
    }
    %c256_i32 = arith.constant 256 : i32
    %3 = arith.muli %arg1, %c256_i32 : i32
    %4 = tpu.assume_multiple %3, 256 : i32
    %5 = arith.index_cast %4 : i32 to index
    %c0 = arith.constant 0 : index
    %6 = vector.load %arg3[%5, %c0] : memref<256x128xbf16, #tpu.memory_space<vmem>>, vector<256x128xbf16>
    %c0_1 = arith.constant 0 : index
    %c0_2 = arith.constant 0 : index
    %7 = vector.load %arg5[%c0_1, %c0_2] : memref<256x128xf32, #tpu.memory_space<vmem>>, vector<256x128xf32>
    %c0_3 = arith.constant 0 : index
    %c0_4 = arith.constant 0 : index
    %8 = vector.load %arg2[%c0_3, %c0_4] : memref<256x256xbf16, #tpu.memory_space<vmem>>, vector<256x256xbf16>
    %cst = arith.constant dense<0.000000e+00> : vector<256x128xf32>
    %9 = tpu.matmul %8, %6, %cst {dimension_numbers = #tpu.dot_dimension_numbers<[1], [0], [0], [1], [0, 0, 1, 1], [], []>} : vector<256x256xbf16>, vector<256x128xbf16>, vector<256x128xf32> -> vector<256x128xf32>
    %10 = arith.addf %7, %9 : vector<256x128xf32>
    %c0_5 = arith.constant 0 : index
    %c0_6 = arith.constant 0 : index
    %11 = vector.load %arg5[%c0_5, %c0_6] : memref<256x128xf32, #tpu.memory_space<vmem>>, vector<256x128xf32>
    tpu.vector_store %arg5[%c0_5, %c0_6], %10 {strides = array<i32>} : memref<256x128xf32, #tpu.memory_space<vmem>>, vector<256x128xf32>,
    %c0_i32_7 = arith.constant 0 : i32
    %12 = arith.cmpi eq, %arg1, %c0_i32_7 : i32
    %13 = arith.extui %12 : i1 to i32
    %c0_i32_8 = arith.constant 0 : i32
    %14 = arith.cmpi ne, %13, %c0_i32_8 : i32
    scf.if %14 {
      %c0_9 = arith.constant 0 : index
      %c0_10 = arith.constant 0 : index
      %15 = vector.load %arg5[%c0_9, %c0_10] : memref<256x128xf32, #tpu.memory_space<vmem>>, vector<256x128xf32>
      %16 = arith.truncf %15 : vector<256x128xf32> to vector<256x128xbf16>
      %c0_11 = arith.constant 0 : index
      %c0_12 = arith.constant 0 : index
      %17 = vector.load %arg4[%c0_11, %c0_12] : memref<256x128xbf16, #tpu.memory_space<vmem>>, vector<256x128xbf16>
      tpu.vector_store %arg4[%c0_11, %c0_12], %16 {strides = array<i32>} : memref<256x128xbf16, #tpu.memory_space<vmem>>, vector<256x128xbf16>,
    } else {
    }
    return
  }
  func.func @transform_0(%arg0: i32, %arg1: i32) -> (i32, i32) {
    %c0_i32 = arith.constant 0 : i32
    return %arg0, %arg1 : i32, i32
  }
  func.func @transform_1(%arg0: i32, %arg1: i32) -> (i32, i32) {
    %c0_i32 = arith.constant 0 : i32
    %c0_i32_0 = arith.constant 0 : i32
    %c0_i32_1 = arith.constant 0 : i32
    return %c0_i32, %c0_i32_0 : i32, i32
  }
  func.func @transform_2(%arg0: i32, %arg1: i32) -> (i32, i32) {
    %c0_i32 = arith.constant 0 : i32
    %c0_i32_0 = arith.constant 0 : i32
    return %arg0, %c0_i32 : i32, i32
  }
}

module attributes {stable_mosaic.version = 11 : i64} {
  func.func @kernel(%arg0: i32, %arg1: i32, %arg2: memref<256x256xbf16, #tpu.memory_space<vmem>>, %arg3: memref<256x128xbf16, #tpu.memory_space<vmem>>, %arg4: memref<256x128xf32, #tpu.memory_space<vmem>>, %arg5: memref<256x128xf32, #tpu.memory_space<vmem>>) attributes {dimension_semantics = [#tpu.dimension_semantics<parallel>, #tpu.dimension_semantics<arbitrary>], iteration_bounds = array<i64: 1, 1>, scalar_prefetch = 0 : i64, scratch_operands = 1 : i64, tpu.core_type = #tpu.core_type<tc>, window_params = [{transform_indices = @transform_0, window_bounds = array<i64: 256, 256>}, {pipeline_mode = #tpu.pipeline_mode<synchronous>, transform_indices = @transform_1, window_bounds = array<i64: 256, 128>}, {transform_indices = @transform_2, window_bounds = array<i64: 256, 128>}]} {
    %c0_i32 = arith.constant 0 : i32
    %0 = arith.cmpi eq, %arg1, %c0_i32 : i32
    %1 = arith.extui %0 : i1 to i32
    %c0_i32_0 = arith.constant 0 : i32
    %2 = arith.cmpi ne, %1, %c0_i32_0 : i32
    scf.if %2 {
      %cst_9 = arith.constant 0.000000e+00 : f32
      %15 = vector.broadcast %cst_9 : f32 to vector<256x128xf32>
      %c0_10 = arith.constant 0 : index
      %c0_11 = arith.constant 0 : index
      %16 = vector.load %arg5[%c0_10, %c0_11] : memref<256x128xf32, #tpu.memory_space<vmem>>, vector<256x128xf32>
      tpu.vector_store %arg5[%c0_10, %c0_11], %15 {strides = array<i32>} : memref<256x128xf32, #tpu.memory_space<vmem>>, vector<256x128xf32>,
    } else {
    }
    %c256_i32 = arith.constant 256 : i32
    %3 = arith.muli %arg1, %c256_i32 : i32
    %4 = tpu.assume_multiple %3, 256 : i32
    %5 = arith.index_cast %4 : i32 to index
    %c0 = arith.constant 0 : index
    %6 = vector.load %arg3[%5, %c0] : memref<256x128xbf16, #tpu.memory_space<vmem>>, vector<256x128xbf16>
    %c0_1 = arith.constant 0 : index
    %c0_2 = arith.constant 0 : index
    %7 = vector.load %arg5[%c0_1, %c0_2] : memref<256x128xf32, #tpu.memory_space<vmem>>, vector<256x128xf32>
    %c0_3 = arith.constant 0 : index
    %c0_4 = arith.constant 0 : index
    %8 = vector.load %arg2[%c0_3, %c0_4] : memref<256x256xbf16, #tpu.memory_space<vmem>>, vector<256x256xbf16>
    %cst = arith.constant dense<0.000000e+00> : vector<256x128xf32>
    %9 = tpu.matmul %8, %6, %cst {dimension_numbers = #tpu.dot_dimension_numbers<[1], [0], [0], [1], [0, 0, 1, 1], [], []>} : vector<256x256xbf16>, vector<256x128xbf16>, vector<256x128xf32> -> vector<256x128xf32>
    %10 = arith.addf %7, %9 : vector<256x128xf32>
    %c0_5 = arith.constant 0 : index
    %c0_6 = arith.constant 0 : index
    %11 = vector.load %arg5[%c0_5, %c0_6] : memref<256x128xf32, #tpu.memory_space<vmem>>, vector<256x128xf32>
    tpu.vector_store %arg5[%c0_5, %c0_6], %10 {strides = array<i32>} : memref<256x128xf32, #tpu.memory_space<vmem>>, vector<256x128xf32>,
    %c0_i32_7 = arith.constant 0 : i32
    %12 = arith.cmpi eq, %arg1, %c0_i32_7 : i32
    %13 = arith.extui %12 : i1 to i32
    %c0_i32_8 = arith.constant 0 : i32
    %14 = arith.cmpi ne, %13, %c0_i32_8 : i32
    scf.if %14 {
      %c0_9 = arith.constant 0 : index
      %c0_10 = arith.constant 0 : index
      %15 = vector.load %arg5[%c0_9, %c0_10] : memref<256x128xf32, #tpu.memory_space<vmem>>, vector<256x128xf32>
      %c0_11 = arith.constant 0 : index
      %c0_12 = arith.constant 0 : index
      %16 = vector.load %arg4[%c0_11, %c0_12] : memref<256x128xf32, #tpu.memory_space<vmem>>, vector<256x128xf32>
      tpu.vector_store %arg4[%c0_11, %c0_12], %15 {strides = array<i32>} : memref<256x128xf32, #tpu.memory_space<vmem>>, vector<256x128xf32>,
    } else {
    }
    return
  }
  func.func @transform_0(%arg0: i32, %arg1: i32) -> (i32, i32) {
    %c0_i32 = arith.constant 0 : i32
    return %arg0, %arg1 : i32, i32
  }
  func.func @transform_1(%arg0: i32, %arg1: i32) -> (i32, i32) {
    %c0_i32 = arith.constant 0 : i32
    %c0_i32_0 = arith.constant 0 : i32
    %c0_i32_1 = arith.constant 0 : i32
    return %c0_i32, %c0_i32_0 : i32, i32
  }
  func.func @transform_2(%arg0: i32, %arg1: i32) -> (i32, i32) {
    %c0_i32 = arith.constant 0 : i32
    %c0_i32_0 = arith.constant 0 : i32
    return %arg0, %c0_i32 : i32, i32
  }
}

</mosaic_0001>

<bundles_post_ra>
// kernel: lgconv_propagate.2
= control target key start
LH: loop header
LB: loop body
LE: loop exit
PB: predicated region body
PF: predicated region fallthrough
CT: control target
= control target key end

     0   :  { %s1405_s1 = inlined_call_operand.vmem [shape: bf16[256,128], index: 1, kind: input, shape index: {}]   ;;  %s1406_s0 = inlined_call_operand.vmem [shape: bf16[256,256], index: 0, kind: input, shape index: {}]   ;;  %s1407_s2 = inlined_call_operand.vmem [shape: bf16[256,128], index: 2, kind: output, shape index: {}]  }
   0x1   :  { %v950_v0 = vld [vmem:[%s1405_s1 + $0x38] sm:$0xff]  ;;  %v949_v2 = vld [vmem:[%s1405_s1 + $0x30] sm:$0xff]  ;;  %v948_v4 = vld [vmem:[%s1405_s1 + $0x28] sm:$0xff] }
   0x2   :  { %v958_v1 = vld [vmem:[%s1405_s1 + $0x78] sm:$0xff]  ;;  %404 = vmatpush.bf16.msra.mxu0 %v950_v0  ;;  %1086 = vmatpush.bf16.msra.mxu2 %v950_v0  ;;  %v957_v3 = vld [vmem:[%s1405_s1 + $0x70] sm:$0xff]  ;;  %v956_v5 = vld [vmem:[%s1405_s1 + $0x68] sm:$0xff] }
   0x3   :  { %493 = vmatpush.bf16.msra.mxu1 %v958_v1  ;;  %1094 = vmatpush.bf16.msra.mxu3 %v958_v1  ;;  %v947_v6 = vld [vmem:[%s1405_s1 + $0x20] sm:$0xff]  ;;  %v946_v8 = vld [vmem:[%s1405_s1 + $0x18] sm:$0xff]  ;;  %v945_v10 = vld [vmem:[%s1405_s1 + $0x10] sm:$0xff] }
   0x4   :  { %v955_v7 = vld [vmem:[%s1405_s1 + $0x60] sm:$0xff]  ;;  %v954_v9 = vld [vmem:[%s1405_s1 + $0x58] sm:$0xff]  ;;  %v953_v11 = vld [vmem:[%s1405_s1 + $0x50] sm:$0xff] }
   0x5   :  { %v944_v12 = vld [vmem:[%s1405_s1 + $0x8] sm:$0xff]  ;;  %v943_v14 = vld [vmem:[%s1405_s1] sm:$0xff]  ;;  %v761_v28 = vld [vmem:[%s1406_s0 + $0x10] sm:$0xf] }
   0x6   :  { %405 = vmatpush.bf16.msra.mxu0 %v949_v2  ;;  %1087 = vmatpush.bf16.msra.mxu2 %v949_v2  ;;  %v952_v13 = vld [vmem:[%s1405_s1 + $0x48] sm:$0xff]  ;;  %v951_v15 = vld [vmem:[%s1405_s1 + $0x40] sm:$0xff]  ;;  %v962_v29 = vld [vmem:[%s1406_s0 + $0x14] sm:$0xf0] }
   0x7   :  { %494 = vmatpush.bf16.msra.mxu1 %v957_v3  ;;  %1095 = vmatpush.bf16.msra.mxu3 %v957_v3  ;;  %v753_v16 = vld [vmem:[%s1406_s0] sm:$0xf]  ;;  %v960_v17 = vld [vmem:[%s1406_s0 + $0x4] sm:$0xf0]  ;;  %v959_v20 = vld [vmem:[%s1406_s0 + $0x4] sm:$0xf]  ;;  %v762_v36 = vor.u32 %v962_v29, %v761_v28 }
   0x8   :  { %v817_v18 = vld [vmem:[%s1406_s0 + $0x80] sm:$0xf]  ;;  %v976_v19 = vld [vmem:[%s1406_s0 + $0x84] sm:$0xf0]  ;;  %v755_v21 = vld [vmem:[%s1406_s0 + $0x8] sm:$0xf0]  ;;  %v754_v24 = vor.u32 %v960_v17, %v753_v16 }
   0x9   :  { %v975_v22 = vld [vmem:[%s1406_s0 + $0x84] sm:$0xf]  ;;  %v819_v23 = vld [vmem:[%s1406_s0 + $0x88] sm:$0xf0]  ;;  %v818_v25 = vor.u32 %v976_v19, %v817_v18  ;;  %v758_v26 = vor.u32 %v959_v20, %v755_v21  ;;  %v825_v30 = vld [vmem:[%s1406_s0 + $0x90] sm:$0xf] }
   0xa   :  { %406 = vmatpush.bf16.msra.mxu0 %v948_v4  ;;  %1088 = vmatpush.bf16.msra.mxu2 %v948_v4  ;;  %v822_v27 = vor.u32 %v975_v22, %v819_v23  ;;  %v978_v31 = vld [vmem:[%s1406_s0 + $0x94] sm:$0xf0]  ;;  %v961_v32 = vld [vmem:[%s1406_s0 + $0x14] sm:$0xf]  ;;  %v763_v33 = vld [vmem:[%s1406_s0 + $0x18] sm:$0xf0] }
   0xb   :  { %495 = vmatpush.bf16.msra.mxu1 %v956_v5  ;;  %1096 = vmatpush.bf16.msra.mxu3 %v956_v5  ;;  %v977_v34 = vld [vmem:[%s1406_s0 + $0x94] sm:$0xf]  ;;  %v827_v35 = vld [vmem:[%s1406_s0 + $0x98] sm:$0xf0]  ;;  %v826_v37 = vor.u32 %v978_v31, %v825_v30  ;;  %v766_v38 = vor.u32 %v961_v32, %v763_v33  ;;  %v769_v40 = vld [vmem:[%s1406_s0 + $0x20] sm:$0xf] }
   0xc   :  { %v830_v39 = vor.u32 %v977_v34, %v827_v35  ;;  %v964_v41 = vld [vmem:[%s1406_s0 + $0x24] sm:$0xf0]  ;;  %v833_v42 = vld [vmem:[%s1406_s0 + $0xa0] sm:$0xf]  ;;  %v963_v44 = vld [vmem:[%s1406_s0 + $0x24] sm:$0xf] }
   0xd   :  { %v980_v43 = vld [vmem:[%s1406_s0 + $0xa4] sm:$0xf0]  ;;  %v771_v45 = vld [vmem:[%s1406_s0 + $0x28] sm:$0xf0]  ;;  %v979_v46 = vld [vmem:[%s1406_s0 + $0xa4] sm:$0xf]  ;;  %v770_v48 = vor.u32 %v964_v41, %v769_v40 }
   0xe   :  { %407 = vmatpush.bf16.msra.mxu0 %v947_v6  ;;  %1089 = vmatpush.bf16.msra.mxu2 %v947_v6  ;;  %v835_v47 = vld [vmem:[%s1406_s0 + $0xa8] sm:$0xf0]  ;;  %v834_v49 = vor.u32 %v980_v43, %v833_v42  ;;  %v774_v50 = vor.u32 %v963_v44, %v771_v45  ;;  %v777_v52 = vld [vmem:[%s1406_s0 + $0x30] sm:$0xf]  ;;  %v966_v53 = vld [vmem:[%s1406_s0 + $0x34] sm:$0xf0] }
   0xf   :  { %496 = vmatpush.bf16.msra.mxu1 %v955_v7  ;;  %1097 = vmatpush.bf16.msra.mxu3 %v955_v7  ;;  %v838_v51 = vor.u32 %v979_v46, %v835_v47  ;;  %v841_v54 = vld [vmem:[%s1406_s0 + $0xb0] sm:$0xf]  ;;  %v982_v55 = vld [vmem:[%s1406_s0 + $0xb4] sm:$0xf0]  ;;  %v965_v56 = vld [vmem:[%s1406_s0 + $0x34] sm:$0xf]  ;;  %v778_v60 = vor.u32 %v966_v53, %v777_v52 }
  0x10   :  { %v779_v57 = vld [vmem:[%s1406_s0 + $0x38] sm:$0xf0]  ;;  %v981_v58 = vld [vmem:[%s1406_s0 + $0xb4] sm:$0xf]  ;;  %v842_v61 = vor.u32 %v982_v55, %v841_v54  ;;  %v785_v0 = vld [vmem:[%s1406_s0 + $0x40] sm:$0xf] }
  0x11   :  { %v843_v59 = vld [vmem:[%s1406_s0 + $0xb8] sm:$0xf0]  ;;  %v782_v62 = vor.u32 %v965_v56, %v779_v57  ;;  %v968_v1 = vld [vmem:[%s1406_s0 + $0x44] sm:$0xf0]  ;;  %v849_v2 = vld [vmem:[%s1406_s0 + $0xc0] sm:$0xf] }
  0x12   :  { %408 = vmatpush.bf16.msra.mxu0 %v946_v8  ;;  %1090 = vmatpush.bf16.msra.mxu2 %v946_v8  ;;  %v846_v63 = vor.u32 %v981_v58, %v843_v59  ;;  %v984_v3 = vld [vmem:[%s1406_s0 + $0xc4] sm:$0xf0]  ;;  %v967_v4 = vld [vmem:[%s1406_s0 + $0x44] sm:$0xf]  ;;  %v787_v5 = vld [vmem:[%s1406_s0 + $0x48] sm:$0xf0]  ;;  %v786_v8 = vor.u32 %v968_v1, %v785_v0 }
  0x13   :  { %497 = vmatpush.bf16.msra.mxu1 %v954_v9  ;;  %1098 = vmatpush.bf16.msra.mxu3 %v954_v9  ;;  %v983_v6 = vld [vmem:[%s1406_s0 + $0xc4] sm:$0xf]  ;;  %v851_v7 = vld [vmem:[%s1406_s0 + $0xc8] sm:$0xf0]  ;;  %v850_v9 = vor.u32 %v984_v3, %v849_v2  ;;  %v969_v16 = vld [vmem:[%s1406_s0 + $0x54] sm:$0xf] }
  0x14   :  { %v795_v17 = vld [vmem:[%s1406_s0 + $0x58] sm:$0xf0]  ;;  %v985_v18 = vld [vmem:[%s1406_s0 + $0xd4] sm:$0xf]  ;;  %v971_v28 = vld [vmem:[%s1406_s0 + $0x64] sm:$0xf] }
  0x15   :  { %v859_v19 = vld [vmem:[%s1406_s0 + $0xd8] sm:$0xf0]  ;;  %v798_v22 = vor.u32 %v969_v16, %v795_v17  ;;  %v803_v29 = vld [vmem:[%s1406_s0 + $0x68] sm:$0xf0]  ;;  %v987_v30 = vld [vmem:[%s1406_s0 + $0xe4] sm:$0xf] }
  0x16   :  { %409 = vmatpush.bf16.msra.mxu0 %v945_v10  ;;  %1091 = vmatpush.bf16.msra.mxu2 %v945_v10  ;;  %v790_v10 = vor.u32 %v967_v4, %v787_v5  ;;  %v862_v23 = vor.u32 %v985_v18, %v859_v19  ;;  %v867_v31 = vld [vmem:[%s1406_s0 + $0xe8] sm:$0xf0]  ;;  %v806_v34 = vor.u32 %v971_v28, %v803_v29  ;;  %v973_v40 = vld [vmem:[%s1406_s0 + $0x74] sm:$0xf]  ;;  %v811_v41 = vld [vmem:[%s1406_s0 + $0x78] sm:$0xf0] }
  0x17   :  { %498 = vmatpush.bf16.msra.mxu1 %v953_v11  ;;  %1099 = vmatpush.bf16.msra.mxu3 %v953_v11  ;;  %v854_v11 = vor.u32 %v983_v6, %v851_v7  ;;  %v870_v35 = vor.u32 %v987_v30, %v867_v31  ;;  %v989_v42 = vld [vmem:[%s1406_s0 + $0xf4] sm:$0xf]  ;;  %v875_v43 = vld [vmem:[%s1406_s0 + $0xf8] sm:$0xf0]  ;;  %v814_v46 = vor.u32 %v973_v40, %v811_v41 }
  0x18   :  { %v878_v47 = vor.u32 %v989_v42, %v875_v43 }
  0x1a   :  { %410 = vmatpush.bf16.msra.mxu0 %v944_v12  ;;  %1092 = vmatpush.bf16.msra.mxu2 %v944_v12  ;;  %v793_v12 = vld [vmem:[%s1406_s0 + $0x50] sm:$0xf] }
  0x1b   :  { %499 = vmatpush.bf16.msra.mxu1 %v952_v13  ;;  %1100 = vmatpush.bf16.msra.mxu3 %v952_v13  ;;  %v970_v13 = vld [vmem:[%s1406_s0 + $0x54] sm:$0xf0] }
  0x1c   :  { %v794_v20 = vor.u32 %v970_v13, %v793_v12 }
  0x1e   :  { %411 = vmatpush.bf16.msra.mxu0 %v943_v14  ;;  %1093 = vmatpush.bf16.msra.mxu2 %v943_v14  ;;  %v857_v14 = vld [vmem:[%s1406_s0 + $0xd0] sm:$0xf] }
  0x1f   :  { %500 = vmatpush.bf16.msra.mxu1 %v951_v15  ;;  %1101 = vmatpush.bf16.msra.mxu3 %v951_v15  ;;  %v986_v15 = vld [vmem:[%s1406_s0 + $0xd4] sm:$0xf0] }
  0x20   :  { %v858_v21 = vor.u32 %v986_v15, %v857_v14 }
  0x21   :  { %412 = vmatmul.bf16.vlgmr.msra.gmra.mxu0 %v754_v24  ;;  %452 = vmatmul.bf16.vlgmr.msra.gmra.mxu2 %v818_v25  ;;  %v801_v24 = vld [vmem:[%s1406_s0 + $0x60] sm:$0xf]  ;;  %v972_v25 = vld [vmem:[%s1406_s0 + $0x64] sm:$0xf0] }
  0x22   :  { %501 = vmatmul.bf16.vlgmr.msra.gmra.mxu1 %v758_v26  ;;  %541 = vmatmul.bf16.vlgmr.msra.gmra.mxu3 %v822_v27  ;;  %v865_v26 = vld [vmem:[%s1406_s0 + $0xe0] sm:$0xf]  ;;  %v988_v27 = vld [vmem:[%s1406_s0 + $0xe4] sm:$0xf0]  ;;  %v802_v32 = vor.u32 %v972_v25, %v801_v24 }
  0x23   :  { %v866_v33 = vor.u32 %v988_v27, %v865_v26 }
  0x31   :  { %417 = vmatmul.bf16.gmra.mxu0 %v762_v36  ;;  %457 = vmatmul.bf16.gmra.mxu2 %v826_v37  ;;  %v809_v36 = vld [vmem:[%s1406_s0 + $0x70] sm:$0xf]  ;;  %v974_v37 = vld [vmem:[%s1406_s0 + $0x74] sm:$0xf0] }
  0x32   :  { %506 = vmatmul.bf16.gmra.mxu1 %v766_v38  ;;  %546 = vmatmul.bf16.gmra.mxu3 %v830_v39  ;;  %v873_v38 = vld [vmem:[%s1406_s0 + $0xf0] sm:$0xf]  ;;  %v990_v39 = vld [vmem:[%s1406_s0 + $0xf4] sm:$0xf0]  ;;  %v810_v44 = vor.u32 %v974_v37, %v809_v36 }
  0x33   :  { %v874_v45 = vor.u32 %v990_v39, %v873_v38 }
  0x41   :  { %422 = vmatmul.bf16.gmra.mxu0 %v770_v48  ;;  %462 = vmatmul.bf16.gmra.mxu2 %v834_v49 }
  0x42   :  { %511 = vmatmul.bf16.gmra.mxu1 %v774_v50  ;;  %551 = vmatmul.bf16.gmra.mxu3 %v838_v51 }
  0x51   :  { %427 = vmatmul.bf16.gmra.mxu0 %v778_v60  ;;  %467 = vmatmul.bf16.gmra.mxu2 %v842_v61 }
  0x52   :  { %516 = vmatmul.bf16.gmra.mxu1 %v782_v62  ;;  %556 = vmatmul.bf16.gmra.mxu3 %v846_v63 }
  0x61   :  { %432 = vmatmul.bf16.gmra.mxu0 %v786_v8  ;;  %472 = vmatmul.bf16.gmra.mxu2 %v850_v9 }
  0x62   :  { %521 = vmatmul.bf16.gmra.mxu1 %v790_v10  ;;  %561 = vmatmul.bf16.gmra.mxu3 %v854_v11 }
  0x71   :  { %437 = vmatmul.bf16.gmra.mxu0 %v794_v20  ;;  %477 = vmatmul.bf16.gmra.mxu2 %v858_v21 }
  0x72   :  { %526 = vmatmul.bf16.gmra.mxu1 %v798_v22  ;;  %566 = vmatmul.bf16.gmra.mxu3 %v862_v23 }
  0x81   :  { %442 = vmatmul.bf16.gmra.mxu0 %v802_v32  ;;  %482 = vmatmul.bf16.gmra.mxu2 %v866_v33 }
  0x82   :  { %531 = vmatmul.bf16.gmra.mxu1 %v806_v34  ;;  %571 = vmatmul.bf16.gmra.mxu3 %v870_v35 }
  0x91   :  { %447 = vmatmul.bf16.gmra.mxu0 %v810_v44  ;;  %487 = vmatmul.bf16.gmra.mxu2 %v874_v45 }
  0x92   :  { %536 = vmatmul.bf16.gmra.mxu1 %v814_v46  ;;  %576 = vmatmul.bf16.gmra.mxu3 %v878_v47 }
  0x9e   :  { %v413_v48 = vpop.f32.mrf.mxu0 }
  0x9f   :  { %v502_v49 = vpop.f32.mrf.mxu1 }
  0xa0   :  { %v503_v54 = vadd.f32 %v502_v49, %v413_v48 }
  0xa4   :  { %v453_v50 = vpop.f32.mrf.mxu2 }
  0xa5   :  { %v542_v51 = vpop.f32.mrf.mxu3 }
  0xa6   :  { %v415_v52 = vpop.f32.mrf.mxu0  ;;  %v543_v59 = vadd.f32 %v542_v51, %v453_v50 }
  0xa7   :  { %v504_v53 = vpop.f32.mrf.mxu1 }
  0xa8   :  { %v505_v55 = vadd.f32 %v504_v53, %v415_v52 }
  0xaa   :  { %v994_v56 = vpack.c.bf16 %v505_v55, %v503_v54 }
  0xac   :  { %995 = vst [vmem:[%s1407_s2] sm:$0xff] %v994_v56   ;;  %v455_v57 = vpop.f32.mrf.mxu2 }
  0xad   :  { %v544_v58 = vpop.f32.mrf.mxu3 }
  0xae   :  { %v545_v60 = vadd.f32 %v544_v58, %v455_v57  ;;  %v418_v61 = vpop.f32.mrf.mxu0 }
  0xaf   :  { %v507_v62 = vpop.f32.mrf.mxu1 }
  0xb0   :  { %v1034_v63 = vpack.c.bf16 %v545_v60, %v543_v59  ;;  %v508_v4 = vadd.f32 %v507_v62, %v418_v61 }
  0xb2   :  { %1078 = vst [vmem:[%s1407_s2 + $0x40] sm:$0xff] %v1034_v63  }
  0xb4   :  { %v458_v0 = vpop.f32.mrf.mxu2 }
  0xb5   :  { %v547_v1 = vpop.f32.mrf.mxu3 }
  0xb6   :  { %v420_v2 = vpop.f32.mrf.mxu0  ;;  %v548_v9 = vadd.f32 %v547_v1, %v458_v0 }
  0xb7   :  { %v509_v3 = vpop.f32.mrf.mxu1 }
  0xb8   :  { %v510_v5 = vadd.f32 %v509_v3, %v420_v2 }
  0xba   :  { %v999_v6 = vpack.c.bf16 %v510_v5, %v508_v4 }
  0xbc   :  { %1071 = vst [vmem:[%s1407_s2 + $0x8] sm:$0xff] %v999_v6   ;;  %v460_v7 = vpop.f32.mrf.mxu2 }
  0xbd   :  { %v549_v8 = vpop.f32.mrf.mxu3 }
  0xbe   :  { %v550_v10 = vadd.f32 %v549_v8, %v460_v7  ;;  %v423_v11 = vpop.f32.mrf.mxu0 }
  0xbf   :  { %v512_v12 = vpop.f32.mrf.mxu1 }
  0xc0   :  { %v1039_v13 = vpack.c.bf16 %v550_v10, %v548_v9  ;;  %v513_v18 = vadd.f32 %v512_v12, %v423_v11 }
  0xc2   :  { %1079 = vst [vmem:[%s1407_s2 + $0x48] sm:$0xff] %v1039_v13  }
  0xc4   :  { %v463_v14 = vpop.f32.mrf.mxu2 }
  0xc5   :  { %v552_v15 = vpop.f32.mrf.mxu3 }
  0xc6   :  { %v425_v16 = vpop.f32.mrf.mxu0  ;;  %v553_v23 = vadd.f32 %v552_v15, %v463_v14 }
  0xc7   :  { %v514_v17 = vpop.f32.mrf.mxu1 }
  0xc8   :  { %v515_v19 = vadd.f32 %v514_v17, %v425_v16 }
  0xca   :  { %v1004_v20 = vpack.c.bf16 %v515_v19, %v513_v18 }
  0xcc   :  { %1072 = vst [vmem:[%s1407_s2 + $0x10] sm:$0xff] %v1004_v20   ;;  %v465_v21 = vpop.f32.mrf.mxu2 }
  0xcd   :  { %v554_v22 = vpop.f32.mrf.mxu3 }
  0xce   :  { %v555_v24 = vadd.f32 %v554_v22, %v465_v21  ;;  %v428_v25 = vpop.f32.mrf.mxu0 }
  0xcf   :  { %v517_v26 = vpop.f32.mrf.mxu1 }
  0xd0   :  { %v1044_v27 = vpack.c.bf16 %v555_v24, %v553_v23  ;;  %v518_v32 = vadd.f32 %v517_v26, %v428_v25 }
  0xd2   :  { %1080 = vst [vmem:[%s1407_s2 + $0x50] sm:$0xff] %v1044_v27  }
  0xd4   :  { %v468_v28 = vpop.f32.mrf.mxu2 }
  0xd5   :  { %v557_v29 = vpop.f32.mrf.mxu3 }
  0xd6   :  { %v430_v30 = vpop.f32.mrf.mxu0  ;;  %v558_v37 = vadd.f32 %v557_v29, %v468_v28 }
  0xd7   :  { %v519_v31 = vpop.f32.mrf.mxu1 }
  0xd8   :  { %v520_v33 = vadd.f32 %v519_v31, %v430_v30 }
  0xda   :  { %v1009_v34 = vpack.c.bf16 %v520_v33, %v518_v32 }
  0xdc   :  { %1073 = vst [vmem:[%s1407_s2 + $0x18] sm:$0xff] %v1009_v34   ;;  %v470_v35 = vpop.f32.mrf.mxu2 }
  0xdd   :  { %v559_v36 = vpop.f32.mrf.mxu3 }
  0xde   :  { %v560_v38 = vadd.f32 %v559_v36, %v470_v35  ;;  %v433_v39 = vpop.f32.mrf.mxu0 }
  0xdf   :  { %v522_v40 = vpop.f32.mrf.mxu1 }
  0xe0   :  { %v1049_v41 = vpack.c.bf16 %v560_v38, %v558_v37  ;;  %v523_v46 = vadd.f32 %v522_v40, %v433_v39 }
  0xe2   :  { %1081 = vst [vmem:[%s1407_s2 + $0x58] sm:$0xff] %v1049_v41  }
  0xe4   :  { %v473_v42 = vpop.f32.mrf.mxu2 }
  0xe5   :  { %v562_v43 = vpop.f32.mrf.mxu3 }
  0xe6   :  { %v435_v44 = vpop.f32.mrf.mxu0  ;;  %v563_v51 = vadd.f32 %v562_v43, %v473_v42 }
  0xe7   :  { %v524_v45 = vpop.f32.mrf.mxu1 }
  0xe8   :  { %v525_v47 = vadd.f32 %v524_v45, %v435_v44 }
  0xea   :  { %v1014_v48 = vpack.c.bf16 %v525_v47, %v523_v46 }
  0xec   :  { %1074 = vst [vmem:[%s1407_s2 + $0x20] sm:$0xff] %v1014_v48   ;;  %v475_v49 = vpop.f32.mrf.mxu2 }
  0xed   :  { %v564_v50 = vpop.f32.mrf.mxu3 }
  0xee   :  { %v565_v52 = vadd.f32 %v564_v50, %v475_v49  ;;  %v438_v53 = vpop.f32.mrf.mxu0 }
  0xef   :  { %v527_v54 = vpop.f32.mrf.mxu1 }
  0xf0   :  { %v1054_v55 = vpack.c.bf16 %v565_v52, %v563_v51  ;;  %v528_v60 = vadd.f32 %v527_v54, %v438_v53 }
  0xf2   :  { %1082 = vst [vmem:[%s1407_s2 + $0x60] sm:$0xff] %v1054_v55  }
  0xf4   :  { %v478_v56 = vpop.f32.mrf.mxu2 }
  0xf5   :  { %v567_v57 = vpop.f32.mrf.mxu3 }
  0xf6   :  { %v440_v58 = vpop.f32.mrf.mxu0  ;;  %v568_v1 = vadd.f32 %v567_v57, %v478_v56 }
  0xf7   :  { %v529_v59 = vpop.f32.mrf.mxu1 }
  0xf8   :  { %v530_v61 = vadd.f32 %v529_v59, %v440_v58 }
  0xfa   :  { %v1019_v62 = vpack.c.bf16 %v530_v61, %v528_v60 }
  0xfc   :  { %1075 = vst [vmem:[%s1407_s2 + $0x28] sm:$0xff] %v1019_v62   ;;  %v480_v63 = vpop.f32.mrf.mxu2 }
  0xfd   :  { %v569_v0 = vpop.f32.mrf.mxu3 }
  0xfe   :  { %v570_v2 = vadd.f32 %v569_v0, %v480_v63  ;;  %v443_v3 = vpop.f32.mrf.mxu0 }
  0xff   :  { %v532_v4 = vpop.f32.mrf.mxu1 }
 0x100   :  { %v1059_v5 = vpack.c.bf16 %v570_v2, %v568_v1  ;;  %v533_v10 = vadd.f32 %v532_v4, %v443_v3 }
 0x102   :  { %1083 = vst [vmem:[%s1407_s2 + $0x68] sm:$0xff] %v1059_v5  }
 0x104   :  { %v483_v6 = vpop.f32.mrf.mxu2 }
 0x105   :  { %v572_v7 = vpop.f32.mrf.mxu3 }
 0x106   :  { %v445_v8 = vpop.f32.mrf.mxu0  ;;  %v573_v15 = vadd.f32 %v572_v7, %v483_v6 }
 0x107   :  { %v534_v9 = vpop.f32.mrf.mxu1 }
 0x108   :  { %v535_v11 = vadd.f32 %v534_v9, %v445_v8 }
 0x10a   :  { %v1024_v12 = vpack.c.bf16 %v535_v11, %v533_v10 }
 0x10c   :  { %1076 = vst [vmem:[%s1407_s2 + $0x30] sm:$0xff] %v1024_v12   ;;  %v485_v13 = vpop.f32.mrf.mxu2 }
 0x10d   :  { %v574_v14 = vpop.f32.mrf.mxu3 }
 0x10e   :  { %v575_v16 = vadd.f32 %v574_v14, %v485_v13  ;;  %v448_v17 = vpop.f32.mrf.mxu0 }
 0x10f   :  { %v537_v18 = vpop.f32.mrf.mxu1 }
 0x110   :  { %v1064_v19 = vpack.c.bf16 %v575_v16, %v573_v15  ;;  %v538_v24 = vadd.f32 %v537_v18, %v448_v17 }
 0x112   :  { %1084 = vst [vmem:[%s1407_s2 + $0x70] sm:$0xff] %v1064_v19  }
 0x114   :  { %v488_v20 = vpop.f32.mrf.mxu2 }
 0x115   :  { %v577_v21 = vpop.f32.mrf.mxu3 }
 0x116   :  { %v450_v22 = vpop.f32.mrf.mxu0  ;;  %v578_v29 = vadd.f32 %v577_v21, %v488_v20 }
 0x117   :  { %v539_v23 = vpop.f32.mrf.mxu1 }
 0x118   :  { %v540_v25 = vadd.f32 %v539_v23, %v450_v22 }
 0x11a   :  { %v1029_v26 = vpack.c.bf16 %v540_v25, %v538_v24 }
 0x11c   :  { %1077 = vst [vmem:[%s1407_s2 + $0x38] sm:$0xff] %v1029_v26   ;;  %v490_v27 = vpop.f32.mrf.mxu2 }
 0x11d   :  { %v579_v28 = vpop.f32.mrf.mxu3 }
 0x11e   :  { %v580_v30 = vadd.f32 %v579_v28, %v490_v27 }
 0x120   :  { %v1069_v31 = vpack.c.bf16 %v580_v30, %v578_v29 }
 0x122   :  { %1085 = vst [vmem:[%s1407_s2 + $0x78] sm:$0xff] %v1069_v31  }

// kernel: lgconv_propagate.3
= control target key start
LH: loop header
LB: loop body
LE: loop exit
PB: predicated region body
PF: predicated region fallthrough
CT: control target
= control target key end

     0   :  { %s1326_s1 = inlined_call_operand.vmem [shape: bf16[256,128], index: 1, kind: input, shape index: {}]   ;;  %s1327_s0 = inlined_call_operand.vmem [shape: bf16[256,256], index: 0, kind: input, shape index: {}]   ;;  %s1328_s2 = inlined_call_operand.vmem [shape: f32[256,128], index: 2, kind: output, shape index: {}]  }
   0x1   :  { %v918_v0 = vld [vmem:[%s1326_s1 + $0x38] sm:$0xff]  ;;  %v917_v2 = vld [vmem:[%s1326_s1 + $0x30] sm:$0xff]  ;;  %v916_v4 = vld [vmem:[%s1326_s1 + $0x28] sm:$0xff] }
   0x2   :  { %v926_v1 = vld [vmem:[%s1326_s1 + $0x78] sm:$0xff]  ;;  %404 = vmatpush.bf16.msra.mxu0 %v918_v0  ;;  %959 = vmatpush.bf16.msra.mxu2 %v918_v0  ;;  %v925_v3 = vld [vmem:[%s1326_s1 + $0x70] sm:$0xff]  ;;  %v924_v5 = vld [vmem:[%s1326_s1 + $0x68] sm:$0xff] }
   0x3   :  { %493 = vmatpush.bf16.msra.mxu1 %v926_v1  ;;  %967 = vmatpush.bf16.msra.mxu3 %v926_v1  ;;  %v915_v6 = vld [vmem:[%s1326_s1 + $0x20] sm:$0xff]  ;;  %v914_v8 = vld [vmem:[%s1326_s1 + $0x18] sm:$0xff]  ;;  %v913_v10 = vld [vmem:[%s1326_s1 + $0x10] sm:$0xff] }
   0x4   :  { %v923_v7 = vld [vmem:[%s1326_s1 + $0x60] sm:$0xff]  ;;  %v922_v9 = vld [vmem:[%s1326_s1 + $0x58] sm:$0xff]  ;;  %v921_v11 = vld [vmem:[%s1326_s1 + $0x50] sm:$0xff] }
   0x5   :  { %v912_v12 = vld [vmem:[%s1326_s1 + $0x8] sm:$0xff]  ;;  %v911_v14 = vld [vmem:[%s1326_s1] sm:$0xff]  ;;  %v729_v28 = vld [vmem:[%s1327_s0 + $0x10] sm:$0xf] }
   0x6   :  { %405 = vmatpush.bf16.msra.mxu0 %v917_v2  ;;  %960 = vmatpush.bf16.msra.mxu2 %v917_v2  ;;  %v920_v13 = vld [vmem:[%s1326_s1 + $0x48] sm:$0xff]  ;;  %v919_v15 = vld [vmem:[%s1326_s1 + $0x40] sm:$0xff]  ;;  %v930_v29 = vld [vmem:[%s1327_s0 + $0x14] sm:$0xf0] }
   0x7   :  { %494 = vmatpush.bf16.msra.mxu1 %v925_v3  ;;  %968 = vmatpush.bf16.msra.mxu3 %v925_v3  ;;  %v721_v16 = vld [vmem:[%s1327_s0] sm:$0xf]  ;;  %v928_v17 = vld [vmem:[%s1327_s0 + $0x4] sm:$0xf0]  ;;  %v927_v20 = vld [vmem:[%s1327_s0 + $0x4] sm:$0xf]  ;;  %v730_v36 = vor.u32 %v930_v29, %v729_v28 }
   0x8   :  { %v785_v18 = vld [vmem:[%s1327_s0 + $0x80] sm:$0xf]  ;;  %v944_v19 = vld [vmem:[%s1327_s0 + $0x84] sm:$0xf0]  ;;  %v723_v21 = vld [vmem:[%s1327_s0 + $0x8] sm:$0xf0]  ;;  %v722_v24 = vor.u32 %v928_v17, %v721_v16 }
   0x9   :  { %v943_v22 = vld [vmem:[%s1327_s0 + $0x84] sm:$0xf]  ;;  %v787_v23 = vld [vmem:[%s1327_s0 + $0x88] sm:$0xf0]  ;;  %v786_v25 = vor.u32 %v944_v19, %v785_v18  ;;  %v726_v26 = vor.u32 %v927_v20, %v723_v21  ;;  %v793_v30 = vld [vmem:[%s1327_s0 + $0x90] sm:$0xf] }
   0xa   :  { %406 = vmatpush.bf16.msra.mxu0 %v916_v4  ;;  %961 = vmatpush.bf16.msra.mxu2 %v916_v4  ;;  %v790_v27 = vor.u32 %v943_v22, %v787_v23  ;;  %v946_v31 = vld [vmem:[%s1327_s0 + $0x94] sm:$0xf0]  ;;  %v929_v32 = vld [vmem:[%s1327_s0 + $0x14] sm:$0xf]  ;;  %v731_v33 = vld [vmem:[%s1327_s0 + $0x18] sm:$0xf0] }
   0xb   :  { %495 = vmatpush.bf16.msra.mxu1 %v924_v5  ;;  %969 = vmatpush.bf16.msra.mxu3 %v924_v5  ;;  %v945_v34 = vld [vmem:[%s1327_s0 + $0x94] sm:$0xf]  ;;  %v795_v35 = vld [vmem:[%s1327_s0 + $0x98] sm:$0xf0]  ;;  %v794_v37 = vor.u32 %v946_v31, %v793_v30  ;;  %v734_v38 = vor.u32 %v929_v32, %v731_v33  ;;  %v737_v40 = vld [vmem:[%s1327_s0 + $0x20] sm:$0xf] }
   0xc   :  { %v798_v39 = vor.u32 %v945_v34, %v795_v35  ;;  %v932_v41 = vld [vmem:[%s1327_s0 + $0x24] sm:$0xf0]  ;;  %v801_v42 = vld [vmem:[%s1327_s0 + $0xa0] sm:$0xf]  ;;  %v931_v44 = vld [vmem:[%s1327_s0 + $0x24] sm:$0xf] }
   0xd   :  { %v948_v43 = vld [vmem:[%s1327_s0 + $0xa4] sm:$0xf0]  ;;  %v739_v45 = vld [vmem:[%s1327_s0 + $0x28] sm:$0xf0]  ;;  %v947_v46 = vld [vmem:[%s1327_s0 + $0xa4] sm:$0xf]  ;;  %v738_v48 = vor.u32 %v932_v41, %v737_v40 }
   0xe   :  { %407 = vmatpush.bf16.msra.mxu0 %v915_v6  ;;  %962 = vmatpush.bf16.msra.mxu2 %v915_v6  ;;  %v803_v47 = vld [vmem:[%s1327_s0 + $0xa8] sm:$0xf0]  ;;  %v802_v49 = vor.u32 %v948_v43, %v801_v42  ;;  %v742_v50 = vor.u32 %v931_v44, %v739_v45  ;;  %v745_v52 = vld [vmem:[%s1327_s0 + $0x30] sm:$0xf]  ;;  %v934_v53 = vld [vmem:[%s1327_s0 + $0x34] sm:$0xf0] }
   0xf   :  { %496 = vmatpush.bf16.msra.mxu1 %v923_v7  ;;  %970 = vmatpush.bf16.msra.mxu3 %v923_v7  ;;  %v806_v51 = vor.u32 %v947_v46, %v803_v47  ;;  %v809_v54 = vld [vmem:[%s1327_s0 + $0xb0] sm:$0xf]  ;;  %v950_v55 = vld [vmem:[%s1327_s0 + $0xb4] sm:$0xf0]  ;;  %v933_v56 = vld [vmem:[%s1327_s0 + $0x34] sm:$0xf]  ;;  %v746_v60 = vor.u32 %v934_v53, %v745_v52 }
  0x10   :  { %v747_v57 = vld [vmem:[%s1327_s0 + $0x38] sm:$0xf0]  ;;  %v949_v58 = vld [vmem:[%s1327_s0 + $0xb4] sm:$0xf]  ;;  %v810_v61 = vor.u32 %v950_v55, %v809_v54  ;;  %v753_v0 = vld [vmem:[%s1327_s0 + $0x40] sm:$0xf] }
  0x11   :  { %v811_v59 = vld [vmem:[%s1327_s0 + $0xb8] sm:$0xf0]  ;;  %v750_v62 = vor.u32 %v933_v56, %v747_v57  ;;  %v936_v1 = vld [vmem:[%s1327_s0 + $0x44] sm:$0xf0]  ;;  %v817_v2 = vld [vmem:[%s1327_s0 + $0xc0] sm:$0xf] }
  0x12   :  { %408 = vmatpush.bf16.msra.mxu0 %v914_v8  ;;  %963 = vmatpush.bf16.msra.mxu2 %v914_v8  ;;  %v814_v63 = vor.u32 %v949_v58, %v811_v59  ;;  %v952_v3 = vld [vmem:[%s1327_s0 + $0xc4] sm:$0xf0]  ;;  %v935_v4 = vld [vmem:[%s1327_s0 + $0x44] sm:$0xf]  ;;  %v755_v5 = vld [vmem:[%s1327_s0 + $0x48] sm:$0xf0]  ;;  %v754_v8 = vor.u32 %v936_v1, %v753_v0 }
  0x13   :  { %497 = vmatpush.bf16.msra.mxu1 %v922_v9  ;;  %971 = vmatpush.bf16.msra.mxu3 %v922_v9  ;;  %v951_v6 = vld [vmem:[%s1327_s0 + $0xc4] sm:$0xf]  ;;  %v819_v7 = vld [vmem:[%s1327_s0 + $0xc8] sm:$0xf0]  ;;  %v818_v9 = vor.u32 %v952_v3, %v817_v2  ;;  %v937_v16 = vld [vmem:[%s1327_s0 + $0x54] sm:$0xf] }
  0x14   :  { %v763_v17 = vld [vmem:[%s1327_s0 + $0x58] sm:$0xf0]  ;;  %v953_v18 = vld [vmem:[%s1327_s0 + $0xd4] sm:$0xf]  ;;  %v939_v28 = vld [vmem:[%s1327_s0 + $0x64] sm:$0xf] }
  0x15   :  { %v827_v19 = vld [vmem:[%s1327_s0 + $0xd8] sm:$0xf0]  ;;  %v766_v22 = vor.u32 %v937_v16, %v763_v17  ;;  %v771_v29 = vld [vmem:[%s1327_s0 + $0x68] sm:$0xf0]  ;;  %v955_v30 = vld [vmem:[%s1327_s0 + $0xe4] sm:$0xf] }
  0x16   :  { %409 = vmatpush.bf16.msra.mxu0 %v913_v10  ;;  %964 = vmatpush.bf16.msra.mxu2 %v913_v10  ;;  %v758_v10 = vor.u32 %v935_v4, %v755_v5  ;;  %v830_v23 = vor.u32 %v953_v18, %v827_v19  ;;  %v835_v31 = vld [vmem:[%s1327_s0 + $0xe8] sm:$0xf0]  ;;  %v774_v34 = vor.u32 %v939_v28, %v771_v29  ;;  %v941_v40 = vld [vmem:[%s1327_s0 + $0x74] sm:$0xf]  ;;  %v779_v41 = vld [vmem:[%s1327_s0 + $0x78] sm:$0xf0] }
  0x17   :  { %498 = vmatpush.bf16.msra.mxu1 %v921_v11  ;;  %972 = vmatpush.bf16.msra.mxu3 %v921_v11  ;;  %v822_v11 = vor.u32 %v951_v6, %v819_v7  ;;  %v838_v35 = vor.u32 %v955_v30, %v835_v31  ;;  %v957_v42 = vld [vmem:[%s1327_s0 + $0xf4] sm:$0xf]  ;;  %v843_v43 = vld [vmem:[%s1327_s0 + $0xf8] sm:$0xf0]  ;;  %v782_v46 = vor.u32 %v941_v40, %v779_v41 }
  0x18   :  { %v846_v47 = vor.u32 %v957_v42, %v843_v43 }
  0x1a   :  { %410 = vmatpush.bf16.msra.mxu0 %v912_v12  ;;  %965 = vmatpush.bf16.msra.mxu2 %v912_v12  ;;  %v761_v12 = vld [vmem:[%s1327_s0 + $0x50] sm:$0xf] }
  0x1b   :  { %499 = vmatpush.bf16.msra.mxu1 %v920_v13  ;;  %973 = vmatpush.bf16.msra.mxu3 %v920_v13  ;;  %v938_v13 = vld [vmem:[%s1327_s0 + $0x54] sm:$0xf0] }
  0x1c   :  { %v762_v20 = vor.u32 %v938_v13, %v761_v12 }
  0x1e   :  { %411 = vmatpush.bf16.msra.mxu0 %v911_v14  ;;  %966 = vmatpush.bf16.msra.mxu2 %v911_v14  ;;  %v825_v14 = vld [vmem:[%s1327_s0 + $0xd0] sm:$0xf] }
  0x1f   :  { %500 = vmatpush.bf16.msra.mxu1 %v919_v15  ;;  %974 = vmatpush.bf16.msra.mxu3 %v919_v15  ;;  %v954_v15 = vld [vmem:[%s1327_s0 + $0xd4] sm:$0xf0] }
  0x20   :  { %v826_v21 = vor.u32 %v954_v15, %v825_v14 }
  0x21   :  { %412 = vmatmul.bf16.vlgmr.msra.gmra.mxu0 %v722_v24  ;;  %452 = vmatmul.bf16.vlgmr.msra.gmra.mxu2 %v786_v25  ;;  %v769_v24 = vld [vmem:[%s1327_s0 + $0x60] sm:$0xf]  ;;  %v940_v25 = vld [vmem:[%s1327_s0 + $0x64] sm:$0xf0] }
  0x22   :  { %501 = vmatmul.bf16.vlgmr.msra.gmra.mxu1 %v726_v26  ;;  %541 = vmatmul.bf16.vlgmr.msra.gmra.mxu3 %v790_v27  ;;  %v833_v26 = vld [vmem:[%s1327_s0 + $0xe0] sm:$0xf]  ;;  %v956_v27 = vld [vmem:[%s1327_s0 + $0xe4] sm:$0xf0]  ;;  %v770_v32 = vor.u32 %v940_v25, %v769_v24 }
  0x23   :  { %v834_v33 = vor.u32 %v956_v27, %v833_v26 }
  0x31   :  { %417 = vmatmul.bf16.gmra.mxu0 %v730_v36  ;;  %457 = vmatmul.bf16.gmra.mxu2 %v794_v37  ;;  %v777_v36 = vld [vmem:[%s1327_s0 + $0x70] sm:$0xf]  ;;  %v942_v37 = vld [vmem:[%s1327_s0 + $0x74] sm:$0xf0] }
  0x32   :  { %506 = vmatmul.bf16.gmra.mxu1 %v734_v38  ;;  %546 = vmatmul.bf16.gmra.mxu3 %v798_v39  ;;  %v841_v38 = vld [vmem:[%s1327_s0 + $0xf0] sm:$0xf]  ;;  %v958_v39 = vld [vmem:[%s1327_s0 + $0xf4] sm:$0xf0]  ;;  %v778_v44 = vor.u32 %v942_v37, %v777_v36 }
  0x33   :  { %v842_v45 = vor.u32 %v958_v39, %v841_v38 }
  0x41   :  { %422 = vmatmul.bf16.gmra.mxu0 %v738_v48  ;;  %462 = vmatmul.bf16.gmra.mxu2 %v802_v49 }
  0x42   :  { %511 = vmatmul.bf16.gmra.mxu1 %v742_v50  ;;  %551 = vmatmul.bf16.gmra.mxu3 %v806_v51 }
  0x51   :  { %427 = vmatmul.bf16.gmra.mxu0 %v746_v60  ;;  %467 = vmatmul.bf16.gmra.mxu2 %v810_v61 }
  0x52   :  { %516 = vmatmul.bf16.gmra.mxu1 %v750_v62  ;;  %556 = vmatmul.bf16.gmra.mxu3 %v814_v63 }
  0x61   :  { %432 = vmatmul.bf16.gmra.mxu0 %v754_v8  ;;  %472 = vmatmul.bf16.gmra.mxu2 %v818_v9 }
  0x62   :  { %521 = vmatmul.bf16.gmra.mxu1 %v758_v10  ;;  %561 = vmatmul.bf16.gmra.mxu3 %v822_v11 }
  0x71   :  { %437 = vmatmul.bf16.gmra.mxu0 %v762_v20  ;;  %477 = vmatmul.bf16.gmra.mxu2 %v826_v21 }
  0x72   :  { %526 = vmatmul.bf16.gmra.mxu1 %v766_v22  ;;  %566 = vmatmul.bf16.gmra.mxu3 %v830_v23 }
  0x81   :  { %442 = vmatmul.bf16.gmra.mxu0 %v770_v32  ;;  %482 = vmatmul.bf16.gmra.mxu2 %v834_v33 }
  0x82   :  { %531 = vmatmul.bf16.gmra.mxu1 %v774_v34  ;;  %571 = vmatmul.bf16.gmra.mxu3 %v838_v35 }
  0x91   :  { %447 = vmatmul.bf16.gmra.mxu0 %v778_v44  ;;  %487 = vmatmul.bf16.gmra.mxu2 %v842_v45 }
  0x92   :  { %536 = vmatmul.bf16.gmra.mxu1 %v782_v46  ;;  %576 = vmatmul.bf16.gmra.mxu3 %v846_v47 }
  0x9e   :  { %v413_v48 = vpop.f32.mrf.mxu0 }
  0x9f   :  { %v502_v49 = vpop.f32.mrf.mxu1 }
  0xa0   :  { %v503_v50 = vadd.f32 %v502_v49, %v413_v48 }
  0xa2   :  { %681 = vst [vmem:[%s1328_s2] sm:$0xff] %v503_v50 }
  0xa4   :  { %v453_v51 = vpop.f32.mrf.mxu2 }
  0xa5   :  { %v542_v52 = vpop.f32.mrf.mxu3 }
  0xa6   :  { %v543_v53 = vadd.f32 %v542_v52, %v453_v51  ;;  %v415_v54 = vpop.f32.mrf.mxu0 }
  0xa7   :  { %v504_v55 = vpop.f32.mrf.mxu1 }
  0xa8   :  { %697 = vst [vmem:[%s1328_s2 + $0x80] sm:$0xff] %v543_v53  ;;  %v505_v56 = vadd.f32 %v504_v55, %v415_v54 }
  0xaa   :  { %682 = vst [vmem:[%s1328_s2 + $0x8] sm:$0xff] %v505_v56 }
  0xac   :  { %v455_v57 = vpop.f32.mrf.mxu2 }
  0xad   :  { %v544_v58 = vpop.f32.mrf.mxu3 }
  0xae   :  { %v545_v59 = vadd.f32 %v544_v58, %v455_v57  ;;  %v418_v60 = vpop.f32.mrf.mxu0 }
  0xaf   :  { %v507_v61 = vpop.f32.mrf.mxu1 }
  0xb0   :  { %698 = vst [vmem:[%s1328_s2 + $0x88] sm:$0xff] %v545_v59  ;;  %v508_v62 = vadd.f32 %v507_v61, %v418_v60 }
  0xb2   :  { %683 = vst [vmem:[%s1328_s2 + $0x10] sm:$0xff] %v508_v62 }
  0xb4   :  { %v458_v63 = vpop.f32.mrf.mxu2 }
  0xb5   :  { %v547_v0 = vpop.f32.mrf.mxu3 }
  0xb6   :  { %v548_v1 = vadd.f32 %v547_v0, %v458_v63  ;;  %v420_v2 = vpop.f32.mrf.mxu0 }
  0xb7   :  { %v509_v3 = vpop.f32.mrf.mxu1 }
  0xb8   :  { %699 = vst [vmem:[%s1328_s2 + $0x90] sm:$0xff] %v548_v1  ;;  %v510_v4 = vadd.f32 %v509_v3, %v420_v2 }
  0xba   :  { %684 = vst [vmem:[%s1328_s2 + $0x18] sm:$0xff] %v510_v4 }
  0xbc   :  { %v460_v5 = vpop.f32.mrf.mxu2 }
  0xbd   :  { %v549_v6 = vpop.f32.mrf.mxu3 }
  0xbe   :  { %v550_v7 = vadd.f32 %v549_v6, %v460_v5  ;;  %v423_v8 = vpop.f32.mrf.mxu0 }
  0xbf   :  { %v512_v9 = vpop.f32.mrf.mxu1 }
  0xc0   :  { %700 = vst [vmem:[%s1328_s2 + $0x98] sm:$0xff] %v550_v7  ;;  %v513_v10 = vadd.f32 %v512_v9, %v423_v8 }
  0xc2   :  { %685 = vst [vmem:[%s1328_s2 + $0x20] sm:$0xff] %v513_v10 }
  0xc4   :  { %v463_v11 = vpop.f32.mrf.mxu2 }
  0xc5   :  { %v552_v12 = vpop.f32.mrf.mxu3 }
  0xc6   :  { %v553_v13 = vadd.f32 %v552_v12, %v463_v11  ;;  %v425_v14 = vpop.f32.mrf.mxu0 }
  0xc7   :  { %v514_v15 = vpop.f32.mrf.mxu1 }
  0xc8   :  { %701 = vst [vmem:[%s1328_s2 + $0xa0] sm:$0xff] %v553_v13  ;;  %v515_v16 = vadd.f32 %v514_v15, %v425_v14 }
  0xca   :  { %686 = vst [vmem:[%s1328_s2 + $0x28] sm:$0xff] %v515_v16 }
  0xcc   :  { %v465_v17 = vpop.f32.mrf.mxu2 }
  0xcd   :  { %v554_v18 = vpop.f32.mrf.mxu3 }
  0xce   :  { %v555_v19 = vadd.f32 %v554_v18, %v465_v17  ;;  %v428_v20 = vpop.f32.mrf.mxu0 }
  0xcf   :  { %v517_v21 = vpop.f32.mrf.mxu1 }
  0xd0   :  { %702 = vst [vmem:[%s1328_s2 + $0xa8] sm:$0xff] %v555_v19  ;;  %v518_v22 = vadd.f32 %v517_v21, %v428_v20 }
  0xd2   :  { %687 = vst [vmem:[%s1328_s2 + $0x30] sm:$0xff] %v518_v22 }
  0xd4   :  { %v468_v23 = vpop.f32.mrf.mxu2 }
  0xd5   :  { %v557_v24 = vpop.f32.mrf.mxu3 }
  0xd6   :  { %v558_v25 = vadd.f32 %v557_v24, %v468_v23  ;;  %v430_v26 = vpop.f32.mrf.mxu0 }
  0xd7   :  { %v519_v27 = vpop.f32.mrf.mxu1 }
  0xd8   :  { %703 = vst [vmem:[%s1328_s2 + $0xb0] sm:$0xff] %v558_v25  ;;  %v520_v28 = vadd.f32 %v519_v27, %v430_v26 }
  0xda   :  { %688 = vst [vmem:[%s1328_s2 + $0x38] sm:$0xff] %v520_v28 }
  0xdc   :  { %v470_v29 = vpop.f32.mrf.mxu2 }
  0xdd   :  { %v559_v30 = vpop.f32.mrf.mxu3 }
  0xde   :  { %v560_v31 = vadd.f32 %v559_v30, %v470_v29  ;;  %v433_v32 = vpop.f32.mrf.mxu0 }
  0xdf   :  { %v522_v33 = vpop.f32.mrf.mxu1 }
  0xe0   :  { %704 = vst [vmem:[%s1328_s2 + $0xb8] sm:$0xff] %v560_v31  ;;  %v523_v34 = vadd.f32 %v522_v33, %v433_v32 }
  0xe2   :  { %689 = vst [vmem:[%s1328_s2 + $0x40] sm:$0xff] %v523_v34 }
  0xe4   :  { %v473_v35 = vpop.f32.mrf.mxu2 }
  0xe5   :  { %v562_v36 = vpop.f32.mrf.mxu3 }
  0xe6   :  { %v563_v37 = vadd.f32 %v562_v36, %v473_v35  ;;  %v435_v38 = vpop.f32.mrf.mxu0 }
  0xe7   :  { %v524_v39 = vpop.f32.mrf.mxu1 }
  0xe8   :  { %705 = vst [vmem:[%s1328_s2 + $0xc0] sm:$0xff] %v563_v37  ;;  %v525_v40 = vadd.f32 %v524_v39, %v435_v38 }
  0xea   :  { %690 = vst [vmem:[%s1328_s2 + $0x48] sm:$0xff] %v525_v40 }
  0xec   :  { %v475_v41 = vpop.f32.mrf.mxu2 }
  0xed   :  { %v564_v42 = vpop.f32.mrf.mxu3 }
  0xee   :  { %v565_v43 = vadd.f32 %v564_v42, %v475_v41  ;;  %v438_v44 = vpop.f32.mrf.mxu0 }
  0xef   :  { %v527_v45 = vpop.f32.mrf.mxu1 }
  0xf0   :  { %706 = vst [vmem:[%s1328_s2 + $0xc8] sm:$0xff] %v565_v43  ;;  %v528_v46 = vadd.f32 %v527_v45, %v438_v44 }
  0xf2   :  { %691 = vst [vmem:[%s1328_s2 + $0x50] sm:$0xff] %v528_v46 }
  0xf4   :  { %v478_v47 = vpop.f32.mrf.mxu2 }
  0xf5   :  { %v567_v48 = vpop.f32.mrf.mxu3 }
  0xf6   :  { %v568_v49 = vadd.f32 %v567_v48, %v478_v47  ;;  %v440_v50 = vpop.f32.mrf.mxu0 }
  0xf7   :  { %v529_v51 = vpop.f32.mrf.mxu1 }
  0xf8   :  { %707 = vst [vmem:[%s1328_s2 + $0xd0] sm:$0xff] %v568_v49  ;;  %v530_v52 = vadd.f32 %v529_v51, %v440_v50 }
  0xfa   :  { %692 = vst [vmem:[%s1328_s2 + $0x58] sm:$0xff] %v530_v52 }
  0xfc   :  { %v480_v53 = vpop.f32.mrf.mxu2 }
  0xfd   :  { %v569_v54 = vpop.f32.mrf.mxu3 }
  0xfe   :  { %v570_v55 = vadd.f32 %v569_v54, %v480_v53  ;;  %v443_v56 = vpop.f32.mrf.mxu0 }
  0xff   :  { %v532_v57 = vpop.f32.mrf.mxu1 }
 0x100   :  { %708 = vst [vmem:[%s1328_s2 + $0xd8] sm:$0xff] %v570_v55  ;;  %v533_v58 = vadd.f32 %v532_v57, %v443_v56 }
 0x102   :  { %693 = vst [vmem:[%s1328_s2 + $0x60] sm:$0xff] %v533_v58 }
 0x104   :  { %v483_v59 = vpop.f32.mrf.mxu2 }
 0x105   :  { %v572_v60 = vpop.f32.mrf.mxu3 }
 0x106   :  { %v573_v61 = vadd.f32 %v572_v60, %v483_v59  ;;  %v445_v62 = vpop.f32.mrf.mxu0 }
 0x107   :  { %v534_v63 = vpop.f32.mrf.mxu1 }
 0x108   :  { %709 = vst [vmem:[%s1328_s2 + $0xe0] sm:$0xff] %v573_v61  ;;  %v535_v0 = vadd.f32 %v534_v63, %v445_v62 }
 0x10a   :  { %694 = vst [vmem:[%s1328_s2 + $0x68] sm:$0xff] %v535_v0 }
 0x10c   :  { %v485_v1 = vpop.f32.mrf.mxu2 }
 0x10d   :  { %v574_v2 = vpop.f32.mrf.mxu3 }
 0x10e   :  { %v575_v3 = vadd.f32 %v574_v2, %v485_v1  ;;  %v448_v4 = vpop.f32.mrf.mxu0 }
 0x10f   :  { %v537_v5 = vpop.f32.mrf.mxu1 }
 0x110   :  { %710 = vst [vmem:[%s1328_s2 + $0xe8] sm:$0xff] %v575_v3  ;;  %v538_v6 = vadd.f32 %v537_v5, %v448_v4 }
 0x112   :  { %695 = vst [vmem:[%s1328_s2 + $0x70] sm:$0xff] %v538_v6 }
 0x114   :  { %v488_v7 = vpop.f32.mrf.mxu2 }
 0x115   :  { %v577_v8 = vpop.f32.mrf.mxu3 }
 0x116   :  { %v578_v9 = vadd.f32 %v577_v8, %v488_v7  ;;  %v450_v10 = vpop.f32.mrf.mxu0 }
 0x117   :  { %v539_v11 = vpop.f32.mrf.mxu1 }
 0x118   :  { %711 = vst [vmem:[%s1328_s2 + $0xf0] sm:$0xff] %v578_v9  ;;  %v540_v12 = vadd.f32 %v539_v11, %v450_v10 }
 0x11a   :  { %696 = vst [vmem:[%s1328_s2 + $0x78] sm:$0xff] %v540_v12 }
 0x11c   :  { %v490_v13 = vpop.f32.mrf.mxu2 }
 0x11d   :  { %v579_v14 = vpop.f32.mrf.mxu3 }
 0x11e   :  { %v580_v15 = vadd.f32 %v579_v14, %v490_v13 }
 0x120   :  { %712 = vst [vmem:[%s1328_s2 + $0xf8] sm:$0xff] %v580_v15 }

</bundles_post_ra>
